<compile_context>
chip_gen: v7x
topology: tpu7x:2x2x1
jax: 0.10.0
libtpu: 0.0.40
codegen_flags: <defaults>
</compile_context>

<pallas_src>
import functools

import jax
import jax.numpy as jnp
from jax.experimental import pallas as pl
from jax.experimental.pallas import tpu as pltpu


def _round_up(x, m):
    return ((x + m - 1) // m) * m


def _policy_rnn_rollout_kernel(
    xh0_ref,               # (B, size_p+hidden_p)        initial [x0 | h0] (padded)
    w_in_ref, b_in_ref,    # (size_p+hidden_p, hidden_p), (1, hidden_p)
    w_out_ref, b_out_ref,  # (hidden_p, out_p),           (1, out_p)
    out_ref,               # (Tc, B, out_p+hidden_p)      per-chunk packed output
    xh_scr,                # VMEM scratch (B, size_p+hidden_p): recurrent carry
    *,
    steps_per_block,
):
    hidden_p = w_in_ref.shape[1]
    size_p = w_in_ref.shape[0] - hidden_p
    out_p = w_out_ref.shape[1]

    # Initialize the carry from the kernel inputs on the first grid step only.
    @pl.when(pl.program_id(0) == 0)
    def _():
        xh_scr[...] = xh0_ref[...].astype(jnp.float32)

    # Hoist loop-invariant reads out of the time loop.
    w_in = w_in_ref[...]
    b_in = b_in_ref[...]
    w_out = w_out_ref[...]
    b_out = b_out_ref[...]

    def step(i, carry):
        xh = xh_scr[...]                                        # (B, size_p+hidden_p)

        # hidden_prime = tanh(i2h(x) + h2h(h))  — one fused MXU matmul.
        hp = jnp.tanh(
            jnp.dot(xh, w_in, preferred_element_type=jnp.float32) + b_in
        )                                                       # (B, hidden_p)

        # [next_input | confidence | pad] = hp @ [wo | wc | 0] + [bo | bc | 0].
        oc = jnp.dot(hp, w_out, preferred_element_type=jnp.float32) + b_out
                                                                # (B, out_p)

        # Lane-dense, 128-aligned per-step output stores.
        out_ref[i, :, :out_p] = oc.astype(out_ref.dtype)
        out_ref[i, :, out_p:] = hp.astype(out_ref.dtype)

        # Lane-aligned recurrent carry update. Both segments start on a
        # 128-lane boundary; any extra lanes hit zero rows of w_in next step.
        xh_scr[:, :size_p] = oc[:, :size_p]
        xh_scr[:, size_p:] = hp
        return carry

    jax.lax.fori_loop(0, steps_per_block, step, 0, unroll=True)


def pack_params(params):
    """Fuse the four Linear layers into two matmuls, zero-padded to 128 lanes."""
    wi, bi = params["i2h"]   # (size, hidden),   (1, hidden)
    wh, bh = params["h2h"]   # (hidden, hidden), (1, hidden)
    wo, bo = params["h2i"]   # (hidden, size),   (1, size)
    wc, bc = params["h2c"]   # (hidden, 1),      (1, 1)

    size, hidden = wi.shape
    size_p = _round_up(size, 128)
    hidden_p = _round_up(hidden, 128)
    out_p = _round_up(size + 1, 128)

    w_in = jnp.zeros((size_p + hidden_p, hidden_p), jnp.float32)
    w_in = w_in.at[:size, :hidden].set(wi)
    w_in = w_in.at[size_p:size_p + hidden, :hidden].set(wh)
    b_in = jnp.zeros((1, hidden_p), jnp.float32).at[:, :hidden].set(bi + bh)

    w_out = jnp.zeros((hidden_p, out_p), jnp.float32)
    w_out = w_out.at[:hidden, :size].set(wo)
    w_out = w_out.at[:hidden, size:size + 1].set(wc)
    b_out = jnp.zeros((1, out_p), jnp.float32)
    b_out = b_out.at[:, :size].set(bo)
    b_out = b_out.at[:, size:size + 1].set(bc)
    return w_in, b_in, w_out, b_out


def policy_rnn_rollout(x0, h0, packed, num_steps=1, steps_per_block=8):
    """Runs `num_steps` cell steps inside a single pallas_call.

    Step t feeds next_input(t) / hidden_prime(t) back as (input, hidden) of
    step t+1. Returns (next_inputs, confidences, hidden_primes) with a leading
    time axis of length num_steps.
    """
    B, size = x0.shape
    hidden = h0.shape[1]
    w_in, b_in, w_out, b_out = packed
    hidden_p = w_in.shape[1]
    size_p = w_in.shape[0] - hidden_p
    out_p = w_out.shape[1]
    width = out_p + hidden_p

    tc = max(1, min(steps_per_block, num_steps))
    n_chunks = pl.cdiv(num_steps, tc)
    t_pad = n_chunks * tc            # extra steps are computed then sliced off

    # Padded, lane-aligned [x0 | h0] carry.
    xh0 = jnp.zeros((B, size_p + hidden_p), jnp.float32)
    xh0 = xh0.at[:, :size].set(x0.astype(jnp.float32))
    xh0 = xh0.at[:, size_p:size_p + hidden].set(h0.astype(jnp.float32))

    grid_spec = pltpu.PrefetchScalarGridSpec(
        num_scalar_prefetch=0,
        grid=(n_chunks,),
        in_specs=[
            # Same block every grid step -> inputs/weights stay VMEM-resident.
            pl.BlockSpec((B, size_p + hidden_p), lambda g: (0, 0)),
            pl.BlockSpec((size_p + hidden_p, hidden_p), lambda g: (0, 0)),
            pl.BlockSpec((1, hidden_p), lambda g: (0, 0)),
            pl.BlockSpec((hidden_p, out_p), lambda g: (0, 0)),
            pl.BlockSpec((1, out_p), lambda g: (0, 0)),
        ],
        out_specs=pl.BlockSpec((tc, B, width), lambda g: (g, 0, 0)),
        scratch_shapes=[pltpu.VMEM((B, size_p + hidden_p), jnp.float32)],
    )

    kernel = functools.partial(_policy_rnn_rollout_kernel, steps_per_block=tc)
    out = pl.pallas_call(
        kernel,
        out_shape=jax.ShapeDtypeStruct((t_pad, B, width), x0.dtype),
        grid_spec=grid_spec,
        compiler_params=pltpu.CompilerParams(
            # The time axis carries the recurrent state -> must stay sequential.
            dimension_semantics=("arbitrary",),
        ),
    )(xh0, w_in, b_in, w_out, b_out)

    out = out[:num_steps]
    next_inputs = out[:, :, :size]
    confidences = out[:, :, size:size + 1]
    hidden_primes = out[:, :, out_p:out_p + hidden]
    return next_inputs, confidences, hidden_primes


def policy_rnn_cell(x, h, packed):
    """Single step — exactly the PyTorch module's forward(input, hidden)."""
    ni, c, hp = policy_rnn_rollout(x, h, packed, num_steps=1)
    return ni[0], c[0], hp[0]


def init_params(key, size, hidden, dtype=jnp.float32):
    """Deterministic synthetic parameter init (PyTorch-like uniform fan-in)."""
    ks = jax.random.split(key, 8)

    def linear(kw, kb, fan_in, fan_out):
        bound = 1.0 / jnp.sqrt(fan_in)
        w = jax.random.uniform(kw, (fan_in, fan_out), dtype, -bound, bound)
        b = jax.random.uniform(kb, (1, fan_out), dtype, -bound, bound)
        return w, b

    return {
        "i2h": linear(ks[0], ks[1], size, hidden),
        "h2h": linear(ks[2], ks[3], hidden, hidden),
        "h2i": linear(ks[4], ks[5], hidden, size),
        "h2c": linear(ks[6], ks[7], hidden, 1),
    }


# ---------------- pure-JAX references ----------------

def _reference_cell(x, h, params):
    wi, bi = params["i2h"]
    wh, bh = params["h2h"]
    wo, bo = params["h2i"]
    wc, bc = params["h2c"]
    hp = jnp.tanh(x @ wi + bi + h @ wh + bh)
    return hp @ wo + bo, hp @ wc + bc, hp


def _reference_rollout(x0, h0, params, num_steps):
    def step(carry, _):
        x, h = carry
        ni, c, hp = _reference_cell(x, h, params)
        return (ni, hp), (ni, c, hp)

    _, (nis, cs, hps) = jax.lax.scan(step, (x0, h0), None, length=num_steps)
    return nis, cs, hps


if __name__ == "__main__":
    B, SIZE, HIDDEN, T = 8, 16, 32, 8
    key = jax.random.PRNGKey(0)
    k_x, k_h, k_p = jax.random.split(key, 3)

    x = jax.random.normal(k_x, (B, SIZE), jnp.float32)
    h = jax.random.normal(k_h, (B, HIDDEN), jnp.float32)
    params = init_params(k_p, SIZE, HIDDEN)
    packed = pack_params(params)

    # --- single step: matches the PyTorch module forward exactly ---
    next_input, confidence, hidden_prime = jax.block_until_ready(
        policy_rnn_cell(x, h, packed)
    )
    ref_ni, ref_c, ref_hp = _reference_cell(x, h, params)
    assert next_input.shape == (B, SIZE)
    assert confidence.shape == (B, 1)
    assert hidden_prime.shape == (B, HIDDEN)
    assert jnp.allclose(next_input, ref_ni, atol=1e-4, rtol=1e-4)
    assert jnp.allclose(confidence, ref_c, atol=1e-4, rtol=1e-4)
    assert jnp.allclose(hidden_prime, ref_hp, atol=1e-4, rtol=1e-4)

    # --- multi-step rollout: weights resident, state carried in VMEM,
    #     time loop chunked inside the kernel body ---
    nis, cs, hps = jax.block_until_ready(
        policy_rnn_rollout(x, h, packed, num_steps=T, steps_per_block=8)
    )
    ref_nis, ref_cs, ref_hps = _reference_rollout(x, h, params, T)
    assert nis.shape == (T, B, SIZE)
    assert cs.shape == (T, B, 1)
    assert hps.shape == (T, B, HIDDEN)
    assert jnp.allclose(nis, ref_nis, atol=5e-4, rtol=5e-4)
    assert jnp.allclose(cs, ref_cs, atol=5e-4, rtol=5e-4)
    assert jnp.allclose(hps, ref_hps, atol=5e-4, rtol=5e-4)

    # --- a rollout length that does not divide the chunk size (pad + slice) ---
    nis2, cs2, hps2 = jax.block_until_ready(
        policy_rnn_rollout(x, h, packed, num_steps=5, steps_per_block=4)
    )
    ref_nis2, ref_cs2, ref_hps2 = _reference_rollout(x, h, params, 5)
    assert jnp.allclose(nis2, ref_nis2, atol=5e-4, rtol=5e-4)
    assert jnp.allclose(cs2, ref_cs2, atol=5e-4, rtol=5e-4)
    assert jnp.allclose(hps2, ref_hps2, atol=5e-4, rtol=5e-4)

    print("KERNEL_OK")
</pallas_src>

<mosaic_0001>
module attributes {stable_mosaic.version = 11 : i64} {
  func.func @_policy_rnn_rollout_kernel(%arg0: i32, %arg1: memref<8x256xf32, #tpu.memory_space<vmem>>, %arg2: memref<256x128xf32, #tpu.memory_space<vmem>>, %arg3: memref<1x128xf32, #tpu.memory_space<vmem>>, %arg4: memref<128x128xf32, #tpu.memory_space<vmem>>, %arg5: memref<1x128xf32, #tpu.memory_space<vmem>>, %arg6: memref<1x8x256xf32, #tpu.memory_space<vmem>>, %arg7: memref<8x256xf32, #tpu.memory_space<vmem>>) attributes {dimension_semantics = [#tpu.dimension_semantics<arbitrary>], iteration_bounds = array<i64: 1>, scalar_prefetch = 0 : i64, scratch_operands = 1 : i64, tpu.core_type = #tpu.core_type<tc>, window_params = [{pipeline_mode = #tpu.pipeline_mode<synchronous>, transform_indices = @transform_0, window_bounds = array<i64: 8, 256>}, {pipeline_mode = #tpu.pipeline_mode<synchronous>, transform_indices = @transform_1, window_bounds = array<i64: 256, 128>}, {pipeline_mode = #tpu.pipeline_mode<synchronous>, transform_indices = @transform_2, window_bounds = array<i64: 1, 128>}, {pipeline_mode = #tpu.pipeline_mode<synchronous>, transform_indices = @transform_3, window_bounds = array<i64: 128, 128>}, {pipeline_mode = #tpu.pipeline_mode<synchronous>, transform_indices = @transform_4, window_bounds = array<i64: 1, 128>}, {transform_indices = @transform_5, window_bounds = array<i64: 1, 8, 256>}]} {
    %c0_i32 = arith.constant 0 : i32
    %0 = arith.cmpi eq, %arg0, %c0_i32 : i32
    %1 = arith.extui %0 : i1 to i32
    %c0_i32_0 = arith.constant 0 : i32
    %2 = arith.cmpi ne, %1, %c0_i32_0 : i32
    scf.if %2 {
      %c0_19 = arith.constant 0 : index
      %c0_20 = arith.constant 0 : index
      %25 = vector.load %arg1[%c0_19, %c0_20] : memref<8x256xf32, #tpu.memory_space<vmem>>, vector<8x256xf32>
      %c0_21 = arith.constant 0 : index
      %c0_22 = arith.constant 0 : index
      %26 = vector.load %arg7[%c0_21, %c0_22] : memref<8x256xf32, #tpu.memory_space<vmem>>, vector<8x256xf32>
      tpu.vector_store %arg7[%c0_21, %c0_22], %25 {strides = array<i32>} : memref<8x256xf32, #tpu.memory_space<vmem>>, vector<8x256xf32>,
    } else {
    }
    %c0 = arith.constant 0 : index
    %c0_1 = arith.constant 0 : index
    %3 = vector.load %arg2[%c0, %c0_1] : memref<256x128xf32, #tpu.memory_space<vmem>>, vector<256x128xf32>
    %c0_2 = arith.constant 0 : index
    %c0_3 = arith.constant 0 : index
    %4 = vector.load %arg3[%c0_2, %c0_3] : memref<1x128xf32, #tpu.memory_space<vmem>>, vector<1x128xf32>
    %c0_4 = arith.constant 0 : index
    %c0_5 = arith.constant 0 : index
    %5 = vector.load %arg4[%c0_4, %c0_5] : memref<128x128xf32, #tpu.memory_space<vmem>>, vector<128x128xf32>
    %c0_6 = arith.constant 0 : index
    %c0_7 = arith.constant 0 : index
    %6 = vector.load %arg5[%c0_6, %c0_7] : memref<1x128xf32, #tpu.memory_space<vmem>>, vector<1x128xf32>
    %c0_i32_8 = arith.constant 0 : i32
    %c0_9 = arith.constant 0 : index
    %c0_10 = arith.constant 0 : index
    %7 = vector.load %arg7[%c0_9, %c0_10] : memref<8x256xf32, #tpu.memory_space<vmem>>, vector<8x256xf32>
    %cst = arith.constant dense<0.000000e+00> : vector<8x128xf32>
    %8 = tpu.matmul %7, %3, %cst {dimension_numbers = #tpu.dot_dimension_numbers<[1], [0], [0], [1], [0, 0, 1, 1], [], []>} : vector<8x256xf32>, vector<256x128xf32>, vector<8x128xf32> -> vector<8x128xf32>
    %9 = vector.broadcast %4 : vector<1x128xf32> to vector<8x128xf32>
    %10 = arith.addf %8, %9 : vector<8x128xf32>
    %11 = math.tanh %10 : vector<8x128xf32>
    %cst_11 = arith.constant dense<0.000000e+00> : vector<8x128xf32>
    %12 = tpu.matmul %11, %5, %cst_11 {dimension_numbers = #tpu.dot_dimension_numbers<[1], [0], [0], [1], [0, 0, 1, 1], [], []>} : vector<8x128xf32>, vector<128x128xf32>, vector<8x128xf32> -> vector<8x128xf32>
    %13 = vector.broadcast %6 : vector<1x128xf32> to vector<8x128xf32>
    %14 = arith.addf %12, %13 : vector<8x128xf32>
    %15 = arith.index_cast %c0_i32_8 : i32 to index
    %c0_12 = arith.constant 0 : index
    %c0_13 = arith.constant 0 : index
    %16 = vector.load %arg6[%15, %c0_12, %c0_13] : memref<1x8x256xf32, #tpu.memory_space<vmem>>, vector<1x8x128xf32>
    %17 = vector.shape_cast %16 : vector<1x8x128xf32> to vector<8x128xf32>
    %18 = vector.shape_cast %14 : vector<8x128xf32> to vector<1x8x128xf32>
    tpu.vector_store %arg6[%15, %c0_12, %c0_13], %18 {strides = array<i32>} : memref<1x8x256xf32, #tpu.memory_space<vmem>>, vector<1x8x128xf32>,
    %19 = arith.index_cast %c0_i32_8 : i32 to index
    %c0_14 = arith.constant 0 : index
    %c128 = arith.constant 128 : index
    %20 = vector.load %arg6[%19, %c0_14, %c128] : memref<1x8x256xf32, #tpu.memory_space<vmem>>, vector<1x8x128xf32>
    %21 = vector.shape_cast %20 : vector<1x8x128xf32> to vector<8x128xf32>
    %22 = vector.shape_cast %11 : vector<8x128xf32> to vector<1x8x128xf32>
    tpu.vector_store %arg6[%19, %c0_14, %c128], %22 {strides = array<i32>} : memref<1x8x256xf32, #tpu.memory_space<vmem>>, vector<1x8x128xf32>,
    %c0_15 = arith.constant 0 : index
    %c0_16 = arith.constant 0 : index
    %23 = vector.load %arg7[%c0_15, %c0_16] : memref<8x256xf32, #tpu.memory_space<vmem>>, vector<8x128xf32>
    tpu.vector_store %arg7[%c0_15, %c0_16], %14 {strides = array<i32>} : memref<8x256xf32, #tpu.memory_space<vmem>>, vector<8x128xf32>,
    %c0_17 = arith.constant 0 : index
    %c128_18 = arith.constant 128 : index
    %24 = vector.load %arg7[%c0_17, %c128_18] : memref<8x256xf32, #tpu.memory_space<vmem>>, vector<8x128xf32>
    tpu.vector_store %arg7[%c0_17, %c128_18], %11 {strides = array<i32>} : memref<8x256xf32, #tpu.memory_space<vmem>>, vector<8x128xf32>,
    %c1_i32 = arith.constant 1 : i32
    return
  }
  func.func @transform_0(%arg0: i32) -> (i32, i32) {
    %c0_i32 = arith.constant 0 : i32
    %c0_i32_0 = arith.constant 0 : i32
    %c0_i32_1 = arith.constant 0 : i32
    return %c0_i32, %c0_i32_0 : i32, i32
  }
  func.func @transform_1(%arg0: i32) -> (i32, i32) {
    %c0_i32 = arith.constant 0 : i32
    %c0_i32_0 = arith.constant 0 : i32
    %c0_i32_1 = arith.constant 0 : i32
    return %c0_i32, %c0_i32_0 : i32, i32
  }
  func.func @transform_2(%arg0: i32) -> (i32, i32) {
    %c0_i32 = arith.constant 0 : i32
    %c0_i32_0 = arith.constant 0 : i32
    %c0_i32_1 = arith.constant 0 : i32
    return %c0_i32, %c0_i32_0 : i32, i32
  }
  func.func @transform_3(%arg0: i32) -> (i32, i32) {
    %c0_i32 = arith.constant 0 : i32
    %c0_i32_0 = arith.constant 0 : i32
    %c0_i32_1 = arith.constant 0 : i32
    return %c0_i32, %c0_i32_0 : i32, i32
  }
  func.func @transform_4(%arg0: i32) -> (i32, i32) {
    %c0_i32 = arith.constant 0 : i32
    %c0_i32_0 = arith.constant 0 : i32
    %c0_i32_1 = arith.constant 0 : i32
    return %c0_i32, %c0_i32_0 : i32, i32
  }
  func.func @transform_5(%arg0: i32) -> (i32, i32, i32) {
    %c0_i32 = arith.constant 0 : i32
    %c0_i32_0 = arith.constant 0 : i32
    %c0_i32_1 = arith.constant 0 : i32
    return %arg0, %c0_i32, %c0_i32_0 : i32, i32, i32
  }
}

</mosaic_0001>

<bundles_post_ra>
// kernel: tpu_custom_call.1
= control target key start
LH: loop header
LB: loop body
LE: loop exit
PB: predicated region body
PF: predicated region fallthrough
CT: control target
= control target key end

     0   :  { %10 = vsyncpa [#allocation4], 0  ;;  %s650_s0 = inlined_call_operand.hbm [shape: f32[8,256], index: 0, kind: input, shape index: {}]   ;;  %s651_s1 = inlined_call_operand.hbm [shape: f32[256,128], index: 1, kind: input, shape index: {}]   ;;  %s652_s2 = inlined_call_operand.vmem [shape: f32[1,128], index: 2, kind: input, shape index: {}]   ;;  %s653_s3 = inlined_call_operand.hbm [shape: f32[128,128], index: 3, kind: input, shape index: {}]   ;;  %s654_s4 = inlined_call_operand.vmem [shape: f32[1,128], index: 4, kind: input, shape index: {}]   ;;  %s655_s5 = inlined_call_operand.hbm [shape: f32[1,8,256], index: 5, kind: output, shape index: {}]  }
   0x1   :  { %11 = vsyncpa [#allocation7], 0 }
   0x2   :  { %12 = vsyncpa [#allocation5], 0  ;;  %s543_s18 = smov [#allocation6]   ;;  %s449_s22 = scalar_lea.hbm %s651_s1, 4096 }
   0x3   :  { %s28_s19 = sshll.u32 %s543_s18, 4  ;;  %p450_p0 = scmp.ne.s32.totalorder %s651_s1, %s449_s22  ;;  %s29_s19 = int_to_ptr.vmem [resolvable:$true] %s28_s19 }
   0x4   :  { %p453_p1 = scmp.lt.u32.totalorder %s449_s22, %s651_s1 }
   0x6   :  { %p455_p2 = pnand %p453_p1, %p450_p0 }
   0x8   :  { %458 = shalt.err (!%p455_p2)
}
   0x9   :  { %s459_s27 = scalar_lea.vmem %s29_s19, 4096  ;;  %p464_p4 = scmp.lt.s32.totalorder %s29_s19, %s29_s19 }
   0xa   :  { %p460_p3 = scmp.ne.s32.totalorder %s29_s19, %s459_s27  ;;  %p465_p5 = scmp.lt.s32.totalorder %s459_s27, %s459_s27 }
   0xc   :  { %p466_p6 = por %p465_p5, %p464_p4 }
   0xe   :  { %p467_p7 = pnand %p466_p6, %p460_p3 }
  0x10   :  { %470 = shalt.err (!%p467_p7)
}
  0x11   :  { %s544_s28 = smov 128   ;;  %s545_s29 = smov 8  }
  0x12   :  { %34 = dma.hbm_to_vmem [thread:$0]  %s651_s1, 4096, %s29_s19, [#allocation7], %s544_s28, %s544_s28, %s545_s29  }
  0x13   :  { %s546_s7 = smov [#allocation3]   ;;  %s547_s9 = smov [#allocation8]  }
  0x14   :  { %s19_s8 = sshll.u32 %s546_s7, 4  ;;  %s42_s10 = sshll.u32 %s547_s9, 4  ;;  %s20_s8 = int_to_ptr.vmem [resolvable:$true] %s19_s8  ;;  %s43_s10 = int_to_ptr.vmem [resolvable:$true] %s42_s10 }
  0x15   :  { %s471_s13 = scalar_lea.hbm %s650_s0, 256 }
  0x16   :  { %p472_p8 = scmp.ne.s32.totalorder %s650_s0, %s471_s13  ;;  %p475_p9 = scmp.lt.u32.totalorder %s471_s13, %s650_s0 }
  0x18   :  { %p477_p10 = pnand %p475_p9, %p472_p8 }
  0x1a   :  { %480 = shalt.err (!%p477_p10)
}
  0x1b   :  { %s481_s1 = scalar_lea.vmem %s20_s8, 256  ;;  %p486_p12 = scmp.lt.s32.totalorder %s20_s8, %s20_s8 }
  0x1c   :  { %p482_p11 = scmp.ne.s32.totalorder %s20_s8, %s481_s1  ;;  %p487_p13 = scmp.lt.s32.totalorder %s481_s1, %s481_s1 }
  0x1e   :  { %p488_p0 = por %p487_p13, %p486_p12 }
  0x20   :  { %p489_p1 = pnand %p488_p0, %p482_p11 }
  0x22   :  { %492 = shalt.err (!%p489_p1)
}
  0x23   :  { %22 = dma.hbm_to_vmem [thread:$0]  %s650_s0, 256, %s20_s8, [#allocation4]  }
  0x24   :  { %s493_s22 = scalar_lea.hbm %s653_s3, 2048 }
  0x25   :  { %p494_p2 = scmp.ne.s32.totalorder %s653_s3, %s493_s22  ;;  %p497_p3 = scmp.lt.u32.totalorder %s493_s22, %s653_s3 }
  0x27   :  { %p499_p4 = pnand %p497_p3, %p494_p2 }
  0x29   :  { %502 = shalt.err (!%p499_p4)
}
  0x2a   :  { %s503_s27 = scalar_lea.vmem %s43_s10, 2048  ;;  %p508_p6 = scmp.lt.s32.totalorder %s43_s10, %s43_s10 }
  0x2b   :  { %p504_p5 = scmp.ne.s32.totalorder %s43_s10, %s503_s27  ;;  %p509_p7 = scmp.lt.s32.totalorder %s503_s27, %s503_s27 }
  0x2d   :  { %p510_p8 = por %p509_p7, %p508_p6 }
  0x2f   :  { %p511_p9 = pnand %p510_p8, %p504_p5 }
  0x31   :  { %514 = shalt.err (!%p511_p9)
}
  0x32   :  { %48 = dma.hbm_to_vmem [thread:$0]  %s653_s3, 2048, %s43_s10, [#allocation7], %s544_s28, %s544_s28, %s545_s29  }
  0x33   :  { %537 = dma.done.wait [#allocation4], 256  }
  0x34   :  { %538 = vsyncadd [#allocation4], 4294967040 }
  0x35   :  { %539 = dma.done.wait [#allocation7], 6144  }
  0x36   :  { %540 = vsyncadd [#allocation7], 4294961152  ;;  %v548_v0 = vmov 0.0|0.0   ;;  %v84_v1 = vld [vmem:[#allocation6 + $0x80] sm:$0xff]  ;;  %v85_v2 = vld [vmem:[#allocation6 + $0x88] sm:$0xff]  ;;  %vm549_vm0 = vmmov 0  }
  0x37   :  { %414 = vmatprep.subr.bf16.mxu1 %v548_v0  ;;  %v68_v3 = vld [vmem:[#allocation6] sm:$0xff]  ;;  %v382_v4 = vpack.c.bf16 %v85_v2, %v84_v1  ;;  %v69_v5 = vld [vmem:[#allocation6 + $0x8] sm:$0xff]  ;;  %v86_v6 = vld [vmem:[#allocation6 + $0x90] sm:$0xff]  ;;  %s551_s7 = smov [#allocation9]  }
  0x38   :  { %v87_v7 = vld [vmem:[#allocation6 + $0x98] sm:$0xff]  ;;  %v384_v8 = vpack.c.bf16 %v69_v5, %v68_v3  ;;  %v70_v10 = vld [vmem:[#allocation6 + $0x10] sm:$0xff]  ;;  %v88_v12 = vld [vmem:[#allocation6 + $0xa0] sm:$0xff]  ;;  %s283_s8 = sshll.u32 %s551_s7, 4  ;;  %s284_s8 = int_to_ptr.vmem [resolvable:$true] %s283_s8 }
  0x39   :  { %v386_v9 = vpack.c.bf16 %v87_v7, %v86_v6  ;;  %v71_v11 = vld [vmem:[#allocation6 + $0x18] sm:$0xff]  ;;  %383 = vmatprep.subr.bf16.mxu0 %v382_v4  ;;  %v89_v13 = vld [vmem:[#allocation6 + $0xa8] sm:$0xff]  ;;  %v72_v16 = vld [vmem:[#allocation6 + $0x20] sm:$0xff]  ;;  %s515_s9 = scalar_lea.vmem %s284_s8, 256  ;;  %p520_p11 = scmp.lt.s32.totalorder %s284_s8, %s284_s8 }
  0x3a   :  { %385 = vmatpush3.bf16.msra.mxu0 %v384_v8  ;;  %v388_v14 = vpack.c.bf16 %v71_v11, %v70_v10  ;;  %v390_v15 = vpack.c.bf16 %v89_v13, %v88_v12  ;;  %v73_v17 = vld [vmem:[#allocation6 + $0x28] sm:$0xff]  ;;  %v90_v18 = vld [vmem:[#allocation6 + $0xb0] sm:$0xff]  ;;  %v91_v19 = vld [vmem:[#allocation6 + $0xb8] sm:$0xff]  ;;  %v550_v12 = vmov 0.0   ;;  %p516_p10 = scmp.ne.s32.totalorder %s284_s8, %s515_s9  ;;  %p521_p12 = scmp.lt.s32.totalorder %s515_s9, %s515_s9 }
  0x3b   :  { %387 = vmatprep.subr.bf16.mxu0 %v386_v9  ;;  %v392_v20 = vpack.c.bf16 %v73_v17, %v72_v16  ;;  %v394_v21 = vpack.c.bf16 %v91_v19, %v90_v18  ;;  %v74_v22 = vld [vmem:[#allocation6 + $0x30] sm:$0xff]  ;;  %v75_v23 = vld [vmem:[#allocation6 + $0x38] sm:$0xff]  ;;  %v92_v24 = vld [vmem:[#allocation6 + $0xc0] sm:$0xff]  ;;  %379 = vmatprep.mubr.msk.f32.mxu1 %vm549_vm0, %v550_v12 }
  0x3c   :  { %v93_v25 = vld [vmem:[#allocation6 + $0xc8] sm:$0xff]  ;;  %v65_v26 = vld [vmem:[#allocation3 + $0x8] sm:$0xff]  ;;  %v101_v27 = vld [vmem:[#allocation8] sm:$0xff]  ;;  %v396_v29 = vpack.c.bf16 %v75_v23, %v74_v22  ;;  %p522_p13 = por %p521_p12, %p520_p11 }
  0x3d   :  { %190 = vmatprep.mubr.f32.mxu0 %v65_v26  ;;  %v102_v28 = vld [vmem:[#allocation8 + $0x8] sm:$0xff]  ;;  %v103_v31 = vld [vmem:[#allocation8 + $0x10] sm:$0xff]  ;;  %v104_v32 = vld [vmem:[#allocation8 + $0x18] sm:$0xff]  ;;  %v398_v33 = vpack.c.bf16 %v93_v25, %v92_v24 }
  0x3e   :  { %389 = vmatpush3.bf16.msra.mxu0 %v388_v14  ;;  %v415_v30 = vpack.c.bf16 %v102_v28, %v101_v27  ;;  %v76_v34 = vld [vmem:[#allocation6 + $0x40] sm:$0xff]  ;;  %v77_v35 = vld [vmem:[#allocation6 + $0x48] sm:$0xff]  ;;  %v94_v36 = vld [vmem:[#allocation6 + $0xd0] sm:$0xff]  ;;  %v418_v38 = vpack.c.bf16 %v104_v32, %v103_v31  ;;  %p523_p0 = pnand %p522_p13, %p516_p10 }
  0x3f   :  { %391 = vmatprep.subr.bf16.mxu0 %v390_v15  ;;  %v95_v37 = vld [vmem:[#allocation6 + $0xd8] sm:$0xff]  ;;  %v105_v39 = vld [vmem:[#allocation8 + $0x20] sm:$0xff]  ;;  %v106_v40 = vld [vmem:[#allocation8 + $0x28] sm:$0xff]  ;;  %v400_v41 = vpack.c.bf16 %v77_v35, %v76_v34 }
  0x40   :  { %416 = vmatpush3.bf16.msra.mxu1 %v415_v30  ;;  %v402_v42 = vpack.c.bf16 %v95_v37, %v94_v36  ;;  %v78_v43 = vld [vmem:[#allocation6 + $0x50] sm:$0xff]  ;;  %v79_v44 = vld [vmem:[#allocation6 + $0x58] sm:$0xff]  ;;  %v96_v45 = vld [vmem:[#allocation6 + $0xe0] sm:$0xff]  ;;  %v421_v47 = vpack.c.bf16 %v106_v40, %v105_v39 }
  0x41   :  { %417 = vmatprep.subr.bf16.mxu1 %v548_v0  ;;  %v97_v46 = vld [vmem:[#allocation6 + $0xe8] sm:$0xff]  ;;  %v107_v48 = vld [vmem:[#allocation8 + $0x30] sm:$0xff]  ;;  %v108_v49 = vld [vmem:[#allocation8 + $0x38] sm:$0xff]  ;;  %v404_v50 = vpack.c.bf16 %v79_v44, %v78_v43 }
  0x42   :  { %393 = vmatpush3.bf16.msra.mxu0 %v392_v20  ;;  %v406_v51 = vpack.c.bf16 %v97_v46, %v96_v45  ;;  %v80_v52 = vld [vmem:[#allocation6 + $0x60] sm:$0xff]  ;;  %v81_v53 = vld [vmem:[#allocation6 + $0x68] sm:$0xff]  ;;  %v98_v54 = vld [vmem:[#allocation6 + $0xf0] sm:$0xff]  ;;  %v424_v56 = vpack.c.bf16 %v108_v49, %v107_v48 }
  0x43   :  { %395 = vmatprep.subr.bf16.mxu0 %v394_v21  ;;  %v99_v55 = vld [vmem:[#allocation6 + $0xf8] sm:$0xff]  ;;  %v408_v57 = vpack.c.bf16 %v81_v53, %v80_v52  ;;  %v82_v59 = vld [vmem:[#allocation6 + $0x70] sm:$0xff]  ;;  %v109_v63 = vld [vmem:[#allocation8 + $0x40] sm:$0xff] }
  0x44   :  { %419 = vmatpush3.bf16.msra.mxu1 %v418_v38  ;;  %v410_v58 = vpack.c.bf16 %v99_v55, %v98_v54  ;;  %v83_v60 = vld [vmem:[#allocation6 + $0x78] sm:$0xff]  ;;  %v64_v62 = vld [vmem:[#allocation3] sm:$0xff]  ;;  %v110_v1 = vld [vmem:[#allocation8 + $0x48] sm:$0xff] }
  0x45   :  { %420 = vmatprep.subr.bf16.mxu1 %v548_v0  ;;  %v412_v61 = vpack.c.bf16 %v83_v60, %v82_v59  ;;  %v427_v2 = vpack.c.bf16 %v110_v1, %v109_v63  ;;  %v111_v3 = vld [vmem:[#allocation8 + $0x50] sm:$0xff]  ;;  %v112_v4 = vld [vmem:[#allocation8 + $0x58] sm:$0xff]  ;;  %v113_v6 = vld [vmem:[#allocation8 + $0x60] sm:$0xff] }
  0x46   :  { %397 = vmatpush3.bf16.msra.mxu0 %v396_v29  ;;  %v430_v5 = vpack.c.bf16 %v112_v4, %v111_v3  ;;  %v114_v7 = vld [vmem:[#allocation8 + $0x68] sm:$0xff]  ;;  %v115_v9 = vld [vmem:[#allocation8 + $0x70] sm:$0xff]  ;;  %v116_v10 = vld [vmem:[#allocation8 + $0x78] sm:$0xff] }
  0x47   :  { %399 = vmatprep.subr.bf16.mxu0 %v398_v33  ;;  %v433_v8 = vpack.c.bf16 %v114_v7, %v113_v6  ;;  %v436_v11 = vpack.c.bf16 %v116_v10, %v115_v9  ;;  %v293_v14 = vld [vmem:[%s652_s2] ss:$0 sm:$0xff] }
  0x48   :  { %422 = vmatpush3.bf16.msra.mxu1 %v421_v47 }
  0x49   :  { %423 = vmatprep.subr.bf16.mxu1 %v548_v0 }
  0x4a   :  { %401 = vmatpush3.bf16.msra.mxu0 %v400_v41 }
  0x4b   :  { %403 = vmatprep.subr.bf16.mxu0 %v402_v42 }
  0x4c   :  { %425 = vmatpush3.bf16.msra.mxu1 %v424_v56 }
  0x4d   :  { %426 = vmatprep.subr.bf16.mxu1 %v548_v0 }
  0x4e   :  { %405 = vmatpush3.bf16.msra.mxu0 %v404_v50 }
  0x4f   :  { %407 = vmatprep.subr.bf16.mxu0 %v406_v51 }
  0x50   :  { %428 = vmatpush3.bf16.msra.mxu1 %v427_v2 }
  0x51   :  { %429 = vmatprep.subr.bf16.mxu1 %v548_v0 }
  0x52   :  { %409 = vmatpush3.bf16.msra.mxu0 %v408_v57 }
  0x53   :  { %411 = vmatprep.subr.bf16.mxu0 %v410_v58 }
  0x54   :  { %431 = vmatpush3.bf16.msra.mxu1 %v430_v5 }
  0x55   :  { %432 = vmatprep.subr.bf16.mxu1 %v548_v0 }
  0x56   :  { %413 = vmatpush3.bf16.msra.mxu0 %v412_v61 }
  0x58   :  { %434 = vmatpush3.bf16.msra.mxu1 %v433_v8 }
  0x59   :  { %191 = vmatmul.mubr.f32.vlgmr.msra.gmra.mrb[0].mxu0 %v64_v62  ;;  %435 = vmatprep.subr.bf16.mxu1 %v548_v0  ;;  %v294_v0 = vld [vmem:[%s654_s4] ss:$0 sm:$0xff] }
  0x5c   :  { %437 = vmatpush3.bf16.msra.mxu1 %v436_v11 }
 0x12c   :  { %v327_v13 = vpop.f32.mrb[0].mxu0 }
 0x12d   :  { %v328_v15 = vpop.f32.mrb[1].mxu0 }
 0x12e   :  { %v329_v16 = vadd.f32 %v328_v15, %v327_v13 }
 0x130   :  { %v193_v17 = vadd.f32 %v329_v16, %v293_v14 }
 0x132   :  { %447 = vtanh.f32 %v193_v17 }
 0x13c   :  { %v448_v18 = vpop.eup %447 }
 0x13d   :  { %274 = vst [vmem:[#allocation9 + $0x8] sm:$0xff] %v448_v18  ;;  %380 = vmatmul.mubr.f32.vlgmr.msra.gmra.mrb[0].mxu1 %v448_v18 }
 0x210   :  { %v269_v19 = vpop.f32.mrb[0].mxu1 }
 0x211   :  { %v270_v20 = vadd.f32 %v294_v0, %v269_v19  ;;  %v381_v21 = vpop.f32.mrb[1].mxu1 }
 0x213   :  { %273 = vst [vmem:[#allocation9] sm:$0xff] %v270_v20 }
 0x214   :  { %526 = shalt.err (!%p523_p0)
}
 0x215   :  { %s527_s11 = scalar_lea.hbm %s655_s5, 256 }
 0x216   :  { %p528_p1 = scmp.ne.s32.totalorder %s655_s5, %s527_s11  ;;  %p531_p2 = scmp.lt.u32.totalorder %s527_s11, %s655_s5 }
 0x218   :  { %p533_p3 = pnand %p531_p2, %p528_p1 }
 0x21a   :  { %536 = shalt.err (!%p533_p3)
}
 0x21b   :  { %286 = dma.vmem_to_hbm [thread:$0]  %s284_s8, 256, %s655_s5, [#allocation5]  }
 0x21c   :  { %541 = dma.done.wait [#allocation5], 256  }
 0x21d   :  { %542 = vsyncadd [#allocation5], 4294967040 }
 0x21e   :  { %290 = vsyncpa [#allocation4], 1 }
 0x21f   :  { %291 = vsyncpa [#allocation7], 1 }
 0x220   :  { %292 = vsyncpa [#allocation5], 1 }

</bundles_post_ra>
